<compile_context>
chip_gen: v6e
topology: v6e:2x2x1
jax: 0.10.0
libtpu: 0.0.40
codegen_flags: <defaults>
</compile_context>

<pallas_src>
import functools
import math
import warnings

import jax
import jax.numpy as jnp
from jax.experimental import pallas as pl
from jax.experimental.pallas import tpu as pltpu

_NEG_BIG = -1e30  # finite "minus infinity" -> softmax stays NaN-free


def _layernorm_f32(x, w, b, eps=1e-5):
    # x: (tq, C) f32, w/b: (1, C) f32
    mu = jnp.mean(x, axis=-1, keepdims=True)
    var = jnp.mean((x - mu) ** 2, axis=-1, keepdims=True)
    return (x - mu) * jax.lax.rsqrt(var + eps) * w + b


def _gelu_tanh(x):
    # GELU(approximate='tanh') exactly as PyTorch defines it (computed in f32)
    c = math.sqrt(2.0 / math.pi)
    return 0.5 * x * (1.0 + jnp.tanh(c * (x + 0.044715 * x * x * x)))


# ---------------- kernel 1: LayerNorm-1 + fused QKV projection ----------------
def _ln_qkv_kernel(x_ref, ln1_w_ref, ln1_b_ref, w_attn_ref, b_attn_ref, qkv_ref,
                   *, compute_dtype):
    x = x_ref[0].astype(jnp.float32)                          # (tq, C), LN stats in f32
    h = _layernorm_f32(x, ln1_w_ref[...], ln1_b_ref[...]).astype(compute_dtype)
    qkv = jnp.dot(h, w_attn_ref[...], preferred_element_type=jnp.float32)
    qkv = qkv + b_attn_ref[...]
    qkv_ref[0] = qkv.astype(qkv_ref.dtype)


# ---------------- kernel 2: causal flash attention, G heads per (batch, head-group, q-tile) ----
def _flash_attn_kernel(q_ref, k_ref, v_ref, y_ref, *, head_dim, heads_per_step,
                       q_tile, kv_tile):
    qi = pl.program_id(2)
    tq = q_tile
    neg = jnp.float32(_NEG_BIG)

    # Causal mask for the diagonal KV block only (q_base-independent since kv_tile == q_tile).
    row = jax.lax.broadcasted_iota(jnp.int32, (tq, kv_tile), 0)
    col = jax.lax.broadcasted_iota(jnp.int32, (tq, kv_tile), 1)
    diag_keep = row >= col

    for g in range(heads_per_step):                            # static, small (1 or 2 typically)
        lo = g * head_dim
        # sm_scale is already folded into the QKV weights by the wrapper.
        q = q_ref[0, :, lo:lo + head_dim]                      # (tq, hd) compute dtype

        def kv_block(j, carry, *, masked):
            m_i, l_i, acc = carry
            start = pl.multiple_of(j * kv_tile, kv_tile)
            k_b = k_ref[0, pl.ds(start, kv_tile), lo:lo + head_dim]   # (tk, hd)
            v_b = v_ref[0, pl.ds(start, kv_tile), lo:lo + head_dim]
            s = jnp.dot(q, k_b.T, preferred_element_type=jnp.float32)  # (tq, tk) f32
            if masked:
                s = jnp.where(diag_keep, s, neg)
            m_new = jnp.maximum(m_i, jnp.max(s, axis=-1, keepdims=True))
            alpha = jnp.exp(m_i - m_new)
            p = jnp.exp(s - m_new)
            l_new = alpha * l_i + jnp.sum(p, axis=-1, keepdims=True)
            acc_new = alpha * acc + jnp.dot(p.astype(v_b.dtype), v_b,
                                            preferred_element_type=jnp.float32)
            return m_new, l_new, acc_new

        carry0 = (jnp.full((tq, 1), neg, jnp.float32),
                  jnp.zeros((tq, 1), jnp.float32),
                  jnp.zeros((tq, head_dim), jnp.float32))
        # Off-diagonal KV blocks: no mask at all; blocks above the diagonal are never touched.
        carry = jax.lax.fori_loop(0, qi, functools.partial(kv_block, masked=False), carry0)
        # Diagonal block: the only one that needs the causal mask.
        _, l_f, acc_f = kv_block(qi, carry, masked=True)

        out_g = acc_f * pl.reciprocal(l_f, approx=False)
        y_ref[0, :, lo:lo + head_dim] = out_g.astype(y_ref.dtype)


# ---------------- kernel 3: attn out-proj + residual, LN-2, MLP + residual ----------------
def _proj_mlp_kernel(x_ref, y_ref, w_cproj_ref, b_cproj_ref, ln2_w_ref, ln2_b_ref,
                     w_fc_ref, b_fc_ref, w_mproj_ref, b_mproj_ref, out_ref,
                     *, compute_dtype):
    # TODO(synk): for very large C (>=1280) on v7x, tile the 4C hidden dim with an extra
    # "arbitrary" grid axis + f32 VMEM accumulator instead of keeping w_fc/w_mproj fully resident.
    x = x_ref[0].astype(jnp.float32)                           # (tq, C) residual path in f32
    y = y_ref[0]                                               # (tq, C) attention output

    attn = jnp.dot(y, w_cproj_ref[...], preferred_element_type=jnp.float32) + b_cproj_ref[...]
    x2 = x + attn

    h2 = _layernorm_f32(x2, ln2_w_ref[...], ln2_b_ref[...]).astype(compute_dtype)
    fc = jnp.dot(h2, w_fc_ref[...], preferred_element_type=jnp.float32) + b_fc_ref[...]
    fc = _gelu_tanh(fc).astype(compute_dtype)
    mlp = jnp.dot(fc, w_mproj_ref[...], preferred_element_type=jnp.float32) + b_mproj_ref[...]

    out_ref[0] = (x2 + mlp).astype(out_ref.dtype)


# ---------------- wrapper ----------------
def _pick_q_tile(T):
    # 256 suits v6e/v7x; pass q_tile=128 explicitly on v5e (or 512 on v6e if VMEM allows).
    for t in (256, 128, 64, 32, 16, 8):
        if T % t == 0:
            return t
    return T


def _pick_head_group(n_head, head_dim):
    """Smallest head-group size G (dividing n_head) with G*head_dim a multiple of 128."""
    for g in range(1, n_head + 1):
        if n_head % g == 0 and (g * head_dim) % 128 == 0:
            return g
    return None


def _const_spec(shape, buffer_count):
    """Weights/biases: same block every grid step. Optionally single-buffer to halve VMEM."""
    index_map = lambda *_: (0,) * len(shape)
    if buffer_count is not None:
        try:
            return pl.BlockSpec(shape, index_map, pipeline_mode=pl.Buffered(buffer_count))
        except TypeError:
            warnings.warn("pl.BlockSpec(pipeline_mode=...) unavailable; weights fall back to "
                          "default double buffering (2x resident weight VMEM).")
    return pl.BlockSpec(shape, index_map)


def gpt2_block(x, params, n_head, *, compute_dtype=jnp.bfloat16, q_tile=None,
               weight_buffer_count=None, vmem_limit_bytes=56 * 1024 * 1024):
    """x: (B, T, C) float32. params: dict of pre-transposed (in, out) weights."""
    B, T, C = x.shape
    assert C % n_head == 0
    hd = C // n_head
    tq = q_tile if q_tile is not None else _pick_q_tile(T)
    assert T % tq == 0 and tq % 8 == 0, "sequence tile must divide T and be a multiple of 8"
    n_qt = T // tq

    G = _pick_head_group(n_head, hd)
    if G is None:
        # TODO(synk): pad head_dim to a 128 multiple for configs where no head group works.
        raise NotImplementedError(
            f"need a head group G with G*head_dim % 128 == 0 (n_head={n_head}, head_dim={hd})")
    Dg = G * hd            # lanes per attention grid step (multiple of 128)
    NG = n_head // G       # number of head groups

    f32 = jnp.float32
    cd = compute_dtype

    # LayerNorm params and biases stay f32; matmul weights run in compute_dtype on the MXU.
    ln1_w = params["ln1_w"].astype(f32); ln1_b = params["ln1_b"].astype(f32)
    ln2_w = params["ln2_w"].astype(f32); ln2_b = params["ln2_b"].astype(f32)

    # Fold the attention softmax scale into the Q columns of the QKV projection (weight-sized,
    # done once) so the attention kernel never rescales q per step.
    sm_scale = 1.0 / math.sqrt(hd)
    qkv_col_scale = jnp.concatenate(
        [jnp.full((C,), sm_scale, f32), jnp.ones((2 * C,), f32)])[None, :]
    w_attn = (params["w_attn"].astype(f32) * qkv_col_scale).astype(cd)
    b_attn = params["b_attn"].astype(f32) * qkv_col_scale

    w_cproj = params["w_cproj"].astype(cd); b_cproj = params["b_cproj"].astype(f32)
    w_fc = params["w_fc"].astype(cd);       b_fc = params["b_fc"].astype(f32)
    w_mproj = params["w_mproj"].astype(cd); b_mproj = params["b_mproj"].astype(f32)

    wspec = functools.partial(_const_spec, buffer_count=weight_buffer_count)
    cparams = lambda sem: pltpu.CompilerParams(dimension_semantics=sem,
                                               vmem_limit_bytes=vmem_limit_bytes)

    # ---- 1) LayerNorm-1 + fused QKV projection -> (B, T, 3C) in compute dtype ----
    qkv = pl.pallas_call(
        functools.partial(_ln_qkv_kernel, compute_dtype=cd),
        out_shape=jax.ShapeDtypeStruct((B, T, 3 * C), cd),
        grid=(B, n_qt),
        in_specs=[
            pl.BlockSpec((1, tq, C), lambda b, t: (b, t, 0)),
            wspec((1, C)), wspec((1, C)),
            wspec((C, 3 * C)), wspec((1, 3 * C)),
        ],
        out_specs=pl.BlockSpec((1, tq, 3 * C), lambda b, t: (b, t, 0)),
        compiler_params=cparams(("parallel", "parallel")),
    )(x, ln1_w, ln1_b, w_attn, b_attn)

    # ---- 2) causal flash attention straight out of / into the fused buffers ----
    # Q/K/V are 128-multiple column slabs of the qkv buffer (no head split/merge in the wrapper);
    # K/V stay resident per (b, head-group); output store is lane-dense (Dg >= 128).
    y = pl.pallas_call(
        functools.partial(_flash_attn_kernel, head_dim=hd, heads_per_step=G,
                          q_tile=tq, kv_tile=tq),
        out_shape=jax.ShapeDtypeStruct((B, T, C), cd),
        grid=(B, NG, n_qt),
        in_specs=[
            pl.BlockSpec((1, tq, Dg), lambda b, g, t: (b, t, g)),          # Q tile
            pl.BlockSpec((1, T, Dg), lambda b, g, t: (b, 0, NG + g)),      # K (resident per b,g)
            pl.BlockSpec((1, T, Dg), lambda b, g, t: (b, 0, 2 * NG + g)),  # V (resident per b,g)
        ],
        out_specs=pl.BlockSpec((1, tq, Dg), lambda b, g, t: (b, t, g)),
        compiler_params=cparams(("parallel", "parallel", "arbitrary")),
    )(qkv, qkv, qkv)

    # ---- 3) attn c_proj + residual, LayerNorm-2, MLP + residual ----
    out = pl.pallas_call(
        functools.partial(_proj_mlp_kernel, compute_dtype=cd),
        out_shape=jax.ShapeDtypeStruct((B, T, C), x.dtype),
        grid=(B, n_qt),
        in_specs=[
            pl.BlockSpec((1, tq, C), lambda b, t: (b, t, 0)),   # x (residual)
            pl.BlockSpec((1, tq, C), lambda b, t: (b, t, 0)),   # attention output
            wspec((C, C)), wspec((1, C)),
            wspec((1, C)), wspec((1, C)),
            wspec((C, 4 * C)), wspec((1, 4 * C)),
            wspec((4 * C, C)), wspec((1, C)),
        ],
        out_specs=pl.BlockSpec((1, tq, C), lambda b, t: (b, t, 0)),
        compiler_params=cparams(("parallel", "parallel")),
    )(x, y, w_cproj, b_cproj, ln2_w, ln2_b, w_fc, b_fc, w_mproj, b_mproj)

    return out


# ---------------- pure-JAX reference (sanity check) ----------------
def reference_block(x, params, n_head):
    B, T, C = x.shape
    hd = C // n_head

    def ln(v, w, b):
        mu = jnp.mean(v, axis=-1, keepdims=True)
        var = jnp.mean((v - mu) ** 2, axis=-1, keepdims=True)
        return (v - mu) * jax.lax.rsqrt(var + 1e-5) * w + b

    h = ln(x, params["ln1_w"], params["ln1_b"])
    qkv = h @ params["w_attn"] + params["b_attn"]
    q, k, v = jnp.split(qkv, 3, axis=-1)
    q = q.reshape(B, T, n_head, hd).transpose(0, 2, 1, 3)
    k = k.reshape(B, T, n_head, hd).transpose(0, 2, 1, 3)
    v = v.reshape(B, T, n_head, hd).transpose(0, 2, 1, 3)
    att = jnp.einsum("bhqd,bhkd->bhqk", q, k) / math.sqrt(hd)
    mask = jnp.tril(jnp.ones((T, T), bool))
    att = jnp.where(mask, att, -jnp.inf)
    att = jax.nn.softmax(att, axis=-1)
    y = jnp.einsum("bhqk,bhkd->bhqd", att, v).transpose(0, 2, 1, 3).reshape(B, T, C)
    x2 = x + y @ params["w_cproj"] + params["b_cproj"]
    h2 = ln(x2, params["ln2_w"], params["ln2_b"])
    c = math.sqrt(2.0 / math.pi)
    fc = h2 @ params["w_fc"] + params["b_fc"]
    fc = 0.5 * fc * (1.0 + jnp.tanh(c * (fc + 0.044715 * fc ** 3)))
    return x2 + fc @ params["w_mproj"] + params["b_mproj"]


if __name__ == "__main__":
    # Small config consistent with the module: n_embd=128, n_head=2 (head_dim=64 like GPT-2),
    # seq=32, batch=2.
    B, T, C, n_head = 2, 32, 128, 2

    key = jax.random.PRNGKey(0)
    keys = jax.random.split(key, 16)
    s = 0.02  # GPT-2 style init scale

    params = {
        "ln1_w": jnp.ones((1, C), jnp.float32),
        "ln1_b": jnp.zeros((1, C), jnp.float32),
        "w_attn": s * jax.random.normal(keys[0], (C, 3 * C), jnp.float32),   # c_attn.weight.T
        "b_attn": s * jax.random.normal(keys[1], (1, 3 * C), jnp.float32),
        "w_cproj": s * jax.random.normal(keys[2], (C, C), jnp.float32),
        "b_cproj": s * jax.random.normal(keys[3], (1, C), jnp.float32),
        "ln2_w": jnp.ones((1, C), jnp.float32),
        "ln2_b": jnp.zeros((1, C), jnp.float32),
        "w_fc": s * jax.random.normal(keys[4], (C, 4 * C), jnp.float32),
        "b_fc": s * jax.random.normal(keys[5], (1, 4 * C), jnp.float32),
        "w_mproj": s * jax.random.normal(keys[6], (4 * C, C), jnp.float32),
        "b_mproj": s * jax.random.normal(keys[7], (1, C), jnp.float32),
    }

    x = jax.random.normal(keys[8], (B, T, C), jnp.float32)
    ref = reference_block(x, params, n_head)

    # f32 path with multiple q tiles: exercises causal block-skipping and the unmasked
    # off-diagonal KV blocks with a tight tolerance.
    out_f32 = jax.block_until_ready(
        gpt2_block(x, params, n_head, compute_dtype=jnp.float32, q_tile=8))
    assert out_f32.shape == (B, T, C)
    assert jnp.allclose(out_f32, ref, atol=2e-3, rtol=2e-3), "f32 kernel mismatch vs reference"

    # Default path: bf16 on the MXU (f32 LayerNorm / softmax / residuals / accumulation).
    out_bf16 = jax.block_until_ready(gpt2_block(x, params, n_head))
    assert out_bf16.shape == (B, T, C)
    assert jnp.allclose(out_bf16, ref, atol=3e-2, rtol=3e-2), "bf16 kernel mismatch vs reference"

    print("KERNEL_OK")
</pallas_src>

<mosaic_0001>
module attributes {stable_mosaic.version = 11 : i64} {
  func.func @_ln_qkv_kernel(%arg0: i32, %arg1: i32, %arg2: memref<1x8x128xf32, #tpu.memory_space<vmem>>, %arg3: memref<1x128xf32, #tpu.memory_space<vmem>>, %arg4: memref<1x128xf32, #tpu.memory_space<vmem>>, %arg5: memref<128x384xf32, #tpu.memory_space<vmem>>, %arg6: memref<1x384xf32, #tpu.memory_space<vmem>>, %arg7: memref<1x8x384xf32, #tpu.memory_space<vmem>>) attributes {dimension_semantics = [#tpu.dimension_semantics<parallel>, #tpu.dimension_semantics<parallel>], iteration_bounds = array<i64: 2, 4>, scalar_prefetch = 0 : i64, scratch_operands = 0 : i64, tpu.core_type = #tpu.core_type<tc>, window_params = [{transform_indices = @transform_0, window_bounds = array<i64: 1, 8, 128>}, {pipeline_mode = #tpu.pipeline_mode<synchronous>, transform_indices = @transform_1, window_bounds = array<i64: 1, 128>}, {pipeline_mode = #tpu.pipeline_mode<synchronous>, transform_indices = @transform_2, window_bounds = array<i64: 1, 128>}, {pipeline_mode = #tpu.pipeline_mode<synchronous>, transform_indices = @transform_3, window_bounds = array<i64: 128, 384>}, {pipeline_mode = #tpu.pipeline_mode<synchronous>, transform_indices = @transform_4, window_bounds = array<i64: 1, 384>}, {transform_indices = @transform_5, window_bounds = array<i64: 1, 8, 384>}]} {
    %c0 = arith.constant 0 : index
    %c0_0 = arith.constant 0 : index
    %c0_1 = arith.constant 0 : index
    %0 = vector.load %arg2[%c0, %c0_0, %c0_1] : memref<1x8x128xf32, #tpu.memory_space<vmem>>, vector<1x8x128xf32>
    %1 = vector.shape_cast %0 : vector<1x8x128xf32> to vector<8x128xf32>
    %c0_2 = arith.constant 0 : index
    %c0_3 = arith.constant 0 : index
    %2 = vector.load %arg3[%c0_2, %c0_3] : memref<1x128xf32, #tpu.memory_space<vmem>>, vector<1x128xf32>
    %c0_4 = arith.constant 0 : index
    %c0_5 = arith.constant 0 : index
    %3 = vector.load %arg4[%c0_4, %c0_5] : memref<1x128xf32, #tpu.memory_space<vmem>>, vector<1x128xf32>
    %cst = arith.constant dense<0.000000e+00> : vector<8xf32>
    %4 = vector.multi_reduction <add>, %1, %cst [1] : vector<8x128xf32> to vector<8xf32>
    %5 = vector.shape_cast %4 : vector<8xf32> to vector<8x1xf32>
    %cst_6 = arith.constant 1.280000e+02 : f32
    %6 = vector.broadcast %cst_6 : f32 to vector<8x1xf32>
    %7 = arith.divf %5, %6 : vector<8x1xf32>
    %8 = vector.broadcast %7 : vector<8x1xf32> to vector<8x128xf32>
    %9 = arith.subf %1, %8 : vector<8x128xf32>
    %10 = arith.mulf %9, %9 : vector<8x128xf32>
    %cst_7 = arith.constant dense<0.000000e+00> : vector<8xf32>
    %11 = vector.multi_reduction <add>, %10, %cst_7 [1] : vector<8x128xf32> to vector<8xf32>
    %12 = vector.shape_cast %11 : vector<8xf32> to vector<8x1xf32>
    %cst_8 = arith.constant 1.280000e+02 : f32
    %13 = vector.broadcast %cst_8 : f32 to vector<8x1xf32>
    %14 = arith.divf %12, %13 : vector<8x1xf32>
    %15 = vector.broadcast %7 : vector<8x1xf32> to vector<8x128xf32>
    %16 = arith.subf %1, %15 : vector<8x128xf32>
    %cst_9 = arith.constant 9.99999974E-6 : f32
    %17 = vector.broadcast %cst_9 : f32 to vector<8x1xf32>
    %18 = arith.addf %14, %17 : vector<8x1xf32>
    %19 = math.rsqrt %18 : vector<8x1xf32>
    %20 = vector.broadcast %19 : vector<8x1xf32> to vector<8x128xf32>
    %21 = arith.mulf %16, %20 : vector<8x128xf32>
    %22 = vector.broadcast %2 : vector<1x128xf32> to vector<8x128xf32>
    %23 = arith.mulf %21, %22 : vector<8x128xf32>
    %24 = vector.broadcast %3 : vector<1x128xf32> to vector<8x128xf32>
    %25 = arith.addf %23, %24 : vector<8x128xf32>
    %c0_10 = arith.constant 0 : index
    %c0_11 = arith.constant 0 : index
    %26 = vector.load %arg5[%c0_10, %c0_11] : memref<128x384xf32, #tpu.memory_space<vmem>>, vector<128x384xf32>
    %cst_12 = arith.constant dense<0.000000e+00> : vector<8x384xf32>
    %27 = tpu.matmul %25, %26, %cst_12 {dimension_numbers = #tpu.dot_dimension_numbers<[1], [0], [0], [1], [0, 0, 1, 1], [], []>} : vector<8x128xf32>, vector<128x384xf32>, vector<8x384xf32> -> vector<8x384xf32>
    %c0_13 = arith.constant 0 : index
    %c0_14 = arith.constant 0 : index
    %28 = vector.load %arg6[%c0_13, %c0_14] : memref<1x384xf32, #tpu.memory_space<vmem>>, vector<1x384xf32>
    %29 = vector.broadcast %28 : vector<1x384xf32> to vector<8x384xf32>
    %30 = arith.addf %27, %29 : vector<8x384xf32>
    %c0_15 = arith.constant 0 : index
    %c0_16 = arith.constant 0 : index
    %c0_17 = arith.constant 0 : index
    %31 = vector.load %arg7[%c0_15, %c0_16, %c0_17] : memref<1x8x384xf32, #tpu.memory_space<vmem>>, vector<1x8x384xf32>
    %32 = vector.shape_cast %31 : vector<1x8x384xf32> to vector<8x384xf32>
    %33 = vector.shape_cast %30 : vector<8x384xf32> to vector<1x8x384xf32>
    tpu.vector_store %arg7[%c0_15, %c0_16, %c0_17], %33 {strides = array<i32>} : memref<1x8x384xf32, #tpu.memory_space<vmem>>, vector<1x8x384xf32>,
    return
  }
  func.func @transform_0(%arg0: i32, %arg1: i32) -> (i32, i32, i32) {
    %c0_i32 = arith.constant 0 : i32
    %c0_i32_0 = arith.constant 0 : i32
    return %arg0, %arg1, %c0_i32 : i32, i32, i32
  }
  func.func @transform_1(%arg0: i32, %arg1: i32) -> (i32, i32) {
    %c0_i32 = arith.constant 0 : i32
    %c0_i32_0 = arith.constant 0 : i32
    %c0_i32_1 = arith.constant 0 : i32
    return %c0_i32, %c0_i32_0 : i32, i32
  }
  func.func @transform_2(%arg0: i32, %arg1: i32) -> (i32, i32) {
    %c0_i32 = arith.constant 0 : i32
    %c0_i32_0 = arith.constant 0 : i32
    %c0_i32_1 = arith.constant 0 : i32
    return %c0_i32, %c0_i32_0 : i32, i32
  }
  func.func @transform_3(%arg0: i32, %arg1: i32) -> (i32, i32) {
    %c0_i32 = arith.constant 0 : i32
    %c0_i32_0 = arith.constant 0 : i32
    %c0_i32_1 = arith.constant 0 : i32
    return %c0_i32, %c0_i32_0 : i32, i32
  }
  func.func @transform_4(%arg0: i32, %arg1: i32) -> (i32, i32) {
    %c0_i32 = arith.constant 0 : i32
    %c0_i32_0 = arith.constant 0 : i32
    %c0_i32_1 = arith.constant 0 : i32
    return %c0_i32, %c0_i32_0 : i32, i32
  }
  func.func @transform_5(%arg0: i32, %arg1: i32) -> (i32, i32, i32) {
    %c0_i32 = arith.constant 0 : i32
    %c0_i32_0 = arith.constant 0 : i32
    return %arg0, %arg1, %c0_i32 : i32, i32, i32
  }
}

</mosaic_0001>

<bundles_post_ra>
// kernel: tpu_custom_call.1
= control target key start
LH: loop header
LB: loop body
LE: loop exit
PB: predicated region body
PF: predicated region fallthrough
CT: control target
= control target key end

     0   :  { %s1199_s0 = inlined_call_operand.hbm [shape: f32[2,32,128], index: 0, kind: input, shape index: {}]   ;;  %s1200_s1 = inlined_call_operand.vmem [shape: f32[1,128], index: 1, kind: input, shape index: {}]   ;;  %s1201_s2 = inlined_call_operand.vmem [shape: f32[1,128], index: 2, kind: input, shape index: {}]   ;;  %s1202_s3 = inlined_call_operand.hbm [shape: f32[128,384], index: 3, kind: input, shape index: {}]   ;;  %s1203_s4 = inlined_call_operand.vmem [shape: f32[1,384], index: 4, kind: input, shape index: {}]   ;;  %s1204_s5 = inlined_call_operand.hbm [shape: f32[2,32,384], index: 5, kind: output, shape index: {}]  }
   0x1   :  { %1212 = sst [smem:[#allocation15_spill]] %s1202_s3 }
   0x2   :  { %1213 = sst [smem:[#allocation16_spill]] %s1203_s4 }
   0x3   :  { %1214 = sst [smem:[#allocation17_spill]] %s1204_s5 }
   0x4   :  { %10 = vsyncpa [#allocation3], 0 }
   0x5   :  { %12 = vsyncpa [#allocation3 + $0x1], 0 }
   0x6   :  { %13 = vsyncpa [#allocation6], 0 }
   0x7   :  { %14 = vsyncpa [#allocation4], 0 }
   0x8   :  { %16 = vsyncpa [#allocation4 + $0x1], 0  ;;  %s983_s18 = smov 0   ;;  %s985_s19 = smov 0  }
   0x9   :  { %s987_s20 = smov 0   ;;  %s989_s21 = smov 0  }
   0xa   :  { %s991_s22 = smov 0   ;;  %s993_s23 = smov 0  }
   0xb   :  { %s995_s24 = smov 0   ;;  %s997_s25 = smov 0  }
   0xc LB: > { %1215 = sst [smem:[#allocation11_spill]] %s916_s18  ;;  %s624_s26 = sadd.s32 4294967295, %s944_s25   ;;  %s944_s25 = sphi %s997_s25, %s22_s25   ;;  %s940_s24 = sphi %s995_s24, %s1243_s24   ;;  %s936_s23 = sphi %s993_s23, %s1242_s23   ;;  %s932_s22 = sphi %s991_s22, %s1241_s22   ;;  %s928_s21 = sphi %s989_s21, %s1240_s21   ;;  %s924_s20 = sphi %s987_s20, %s1239_s20   ;;  %s920_s19 = sphi %s985_s19, %s1238_s19   ;;  %s916_s18 = sphi %s983_s18, %s1237_s18  }
   0xd   : > { %s625_s27 = sadd.s32 4294967294, %s944_s25   ;;  %p56_p0 = scmp.ne.s32.totalorder %s920_s19, %s916_s18 }
   0xe   : > { %p1027_p1 = scmp.eq.s32.totalorder %s624_s26, 0  ;;  %p1031_p2 = scmp.eq.s32.totalorder %s624_s26, 7 }
   0xf   : > { %p172_p3 = scmp.eq.s32.totalorder %s625_s27, 7  ;;  %p626_p5 = scmp.ge.s32.totalorder %s944_s25, 1 }
  0x10   : > { %p1037_p4 = por %p1027_p1, %p56_p0  ;;  %p179_p7 = scmp.lt.s32.totalorder %s944_s25, 9 }
  0x11   : > { %p1042_p6 = por %p172_p3, %p56_p0  ;;  %s946_s8 = smov [#allocation5]  }
  0x12   : > { %s1218_s30 = scalar_select %p1037_p4, 1, 0 }
  0x13   : > { %s1219_s6 = scalar_select %p1042_p6, 1, 0 }
  0x14   : > { %p1047_p8 = pnand %p626_p5, %p179_p7  ;;  %s197_s9 = sshll.u32 %s946_s8, 4  ;;  %s198_s9 = int_to_ptr.vmem [resolvable:$true] %s197_s9 }
  0x15   : > { %1220 = sst [smem:[#allocation12_spill]] %s1219_s6  ;;  %s801_s10 = scalar_lea.vmem %s198_s9, 6144 }
  0x16   : > { %p703_p9 = pneg %p1047_p8  ;;  %p802_p12 = scmp.ne.s32.totalorder %s198_s9, %s801_s10 }
  0x17   : > { %p809_p3 = scmp.lt.s32.totalorder %s198_s9, %s198_s9  ;;  %p810_p6 = scmp.lt.s32.totalorder %s801_s10, %s801_s10 }
  0x18   : > { %p704_p10 = pnand %p703_p9, %p1027_p1 }
  0x19   : > { %p811_p4 = por %p810_p6, %p809_p3 }
  0x1a   : > { %p792_p11 = pneg %p704_p10 }
  0x1c   : > { %p804_p13 = pnand %p802_p12, %p792_p11 }
  0x1e   : > { %p805_p0 = pneg %p804_p13 }
  0x20   : > { %p812_p5 = pnand %p811_p4, %p805_p0 }
  0x22   : > { %815 = shalt.err (!%p812_p5)
}
  0x23   : > { %s947_s11 = smov 384   ;;  %s948_s12 = smov 24  }
  0x24   : > { %s1222_s3 = sld [smem:[#allocation15_spill]]  ;;  %s31_s15 = sadd.s32 1, %s936_s23 }
  0x25   : > { %p32_p4 = scmp.ge.s32.totalorder %s31_s15, 4  ;;  %s34_s16 = sadd.s32 1, %s940_s24 }
  0x26   : > { %s43_s17 = sadd.s32 1, %s924_s20  ;;  %p50_p6 = scmp.ne.s32.totalorder %s924_s20, %s920_s19 }
  0x27   : > { %s1245_s15 = smov (%p32_p4, %s31_s15), 0  ;;  %s1247_s16 = smov (!%p32_p4, %s34_s16), %s940_s24 }
  0x28   : > { %1223 = sst [smem:[#allocation13_spill]] %s1245_s15  ;;  %s39_s26 = ssub.s32 %s936_s23, %s1245_s15 }
  0x29   : > { %p51_p7 = scmp.eq.s32.totalorder %s944_s25, 0  ;;  %p36_p9 = scmp.ge.s32.totalorder %s1247_s16, 2 }
  0x2a   : > { %706 = dma.hbm_to_vmem [thread:$0]  (!%p704_p10), %s1222_s3, 6144, %s198_s9, [#allocation6], %s947_s11, %s947_s11, %s948_s12  }
  0x2b   : > { %p1071_p11 = por %p1031_p2, %p50_p6  ;;  %p1075_p10 = por %p51_p7, %p50_p6 }
  0x2c   : > { %p716_p12 = scmp.lt.s32.totalorder %s944_s25, 8  ;;  %s1249_s16 = smov (%p36_p9, %s1247_s16), 0 }
  0x2d   : > { %s1224_s27 = scalar_select %p1071_p11, 1, 0 }
  0x2e   : > { %s214_s9 = sand.u32 1, %s924_s20   ;;  %s630_s10 = sshll.u32 %s940_s24, 2 }
  0x2f   : > { %1225 = sst [smem:[#allocation14_spill]] %s1224_s27  ;;  %s38_s11 = ssub.s32 %s940_s24, %s1249_s16 }
  0x30   : > { %s40_s12 = sor.u32 %s39_s26, %s38_s11  ;;  %s629_s13 = sshll.u32 %s214_s9, 3 }
  0x31   : > { %p41_p13 = scmp.eq.s32.totalorder %s40_s12, 0  ;;  %s223_s29 = sadd.s32 %s936_s23, %s630_s10 }
  0x32   : > { %s218_s14 = scalar_lea.vmem [#allocation2], %s629_s13  ;;  %s631_s6 = sshll.u32 %s223_s29, 7 }
  0x33   : > { %s227_s3 = sshll.u32 %s218_s14, 4  ;;  %s225_s27 = scalar_lea.hbm %s1199_s0, %s631_s6  ;;  %s228_s3 = int_to_ptr.vmem [resolvable:$true] %s227_s3 }
  0x34   : > { %s1088_s15 = scalar_select %p41_p13, %s924_s20, %s43_s17  }
  0x35   : > { %p1097_p2 = pnand %p716_p12, %p1075_p10  ;;  %s215_s26 = scalar_lea.sflag [#allocation3], %s214_s9 }
  0x36   : > { %s829_s10 = scalar_lea.vmem %s228_s3, 128  ;;  %s949_s17 = smov [#allocation2]  }
  0x37   : > { %p818_p0 = pneg %p1097_p2  ;;  %p830_p3 = scmp.ne.s32.totalorder %s228_s3, %s829_s10 }
  0x38   : > { %s834_s11 = sshll.u32 %s949_s17, 4  ;;  %s835_s11 = int_to_ptr.vmem [resolvable:$false] %s834_s11 }
  0x39   : > { %p832_p5 = pnand %p830_p3, %p818_p0  ;;  %s836_s12 = scalar_lea.vmem %s835_s11, 256 }
  0x3a   : > { %p837_p6 = scmp.lt.s32.totalorder %s228_s3, %s835_s11  ;;  %p838_p7 = scmp.lt.s32.totalorder %s836_s12, %s829_s10 }
  0x3b   : > { %p833_p4 = pneg %p832_p5 }
  0x3c   : > { %p839_p9 = por %p838_p7, %p837_p6 }
  0x3e   : > { %p840_p13 = pnand %p839_p9, %p833_p4 }
  0x40   : > { %843 = shalt.err (!%p840_p13)
}
  0x41   : > { %710 = dma.hbm_to_vmem [thread:$0]  (!%p1097_p2), %s225_s27, 128, %s228_s3, %s215_s26  }
  0x42   : > { %236 = sbr.rel (%p1047_p8) target bundleno = 591 (0x24f), region = 40  ;;  %s1108_s5 = sand.u32 (!%p1047_p8), 1, %s920_s19  }
  0x43   : > { %s633_s18 = sshll.u32 (!%p1047_p8), %s1108_s5, 3  ;;  %s239_s6 = scalar_lea.sflag (!%p1047_p8), [#allocation3], %s1108_s5 }
  0x44   : > { %s242_s8 = scalar_lea.vmem (!%p1047_p8), [#allocation2], %s633_s18  ;;  %p1228_p10 = scmp.ne.s32.totalorder (!%p1047_p8), %s1218_s30, 0 }
  0x47   : > { %903 = dma.done.wait (%p1228_p10), %s239_s6, 128  }
  0x48   : > { %905 = vsyncadd (%p1228_p10), %s239_s6, 4294967168 }
  0x49   : > { %907 = dma.done.wait (%p1027_p1), [#allocation6], 6144  }
  0x4a   : > { %909 = vsyncadd (%p1027_p1), [#allocation6], 4294961152  ;;  %v273_v0 = vld [vmem:[%s242_s8] sm:$0xff]  ;;  %v347_v2 = vld [vmem:[#allocation5 + $0x168] sm:$0xff]  ;;  %v950_v4 = vmov 0.0   ;;  %vm951_vm0 = vmmov 0   ;;  %v352_v63 = vlaneseq }
  0x4b   : > { %276 = vadd.xlane.f32.xlu0 %v273_v0  ;;  %v348_v1 = vld [vmem:[#allocation5 + $0x170] sm:$0xff]  ;;  %v349_v3 = vld [vmem:[#allocation5 + $0x178] sm:$0xff]  ;;  %657 = vmatprep.subr.mxu1 %v950_v4  ;;  %v346_v7 = vld [vmem:[#allocation5 + $0x160] sm:$0xff]  ;;  %s692_s7 = smul.u32 24, %s1108_s5  ;;  %s1229_s14 = sld [smem:[#allocation16_spill]] }
  0x4c   : > { %367 = vmatprep.subr.mxu0 %v348_v1  ;;  %v345_v5 = vld [vmem:[#allocation5 + $0x158] sm:$0xff]  ;;  %v344_v6 = vld [vmem:[#allocation5 + $0x150] sm:$0xff]  ;;  %658 = vmatpush3.msra.mxu1 %v349_v3  ;;  %v342_v8 = vld [vmem:[#allocation5 + $0x140] sm:$0xff]  ;;  %s693_s27 = smul.u32 3, %s928_s21  ;;  %s1231_s18 = sld [smem:[#allocation17_spill]] }
  0x4d   : > { %368 = vmatpush1.msra.mxu0 %v347_v2  ;;  %659 = vmatprep.subr.mxu1 %v950_v4  ;;  %v341_v9 = vld [vmem:[#allocation5 + $0x138] sm:$0xff]  ;;  %v343_v10 = vld [vmem:[#allocation5 + $0x148] sm:$0xff]  ;;  %v338_v12 = vld [vmem:[#allocation5 + $0x120] sm:$0xff]  ;;  %s694_s9 = smul.u32 12, %s932_s22  ;;  %s272_s11 = scalar_lea.vmem [#allocation7], %s692_s7 }
  0x4e   : > { %369 = vmatprep.subr.mxu0 %v345_v5  ;;  %660 = vmatpush3.msra.mxu1 %v346_v7  ;;  %v339_v11 = vld [vmem:[#allocation5 + $0x128] sm:$0xff]  ;;  %v340_v13 = vld [vmem:[#allocation5 + $0x130] sm:$0xff]  ;;  %v337_v20 = vld [vmem:[#allocation5 + $0x118] sm:$0xff]  ;;  %s528_s12 = sshll.u32 %s272_s11, 4  ;;  %s512_s3 = scalar_lea.sflag [#allocation4], %s1108_s5  ;;  %s529_s12 = int_to_ptr.vmem [resolvable:$true] %s528_s12 }
  0x4f   : > { %370 = vmatpush1.msra.mxu0 %v344_v6  ;;  %661 = vmatprep.subr.mxu1 %v950_v4  ;;  %v336_v18 = vld [vmem:[#allocation5 + $0x110] sm:$0xff]  ;;  %v335_v19 = vld [vmem:[#allocation5 + $0x108] sm:$0xff]  ;;  %v333_v21 = vld [vmem:[#allocation5 + $0xf8] sm:$0xff]  ;;  %s524_s26 = sadd.s32 %s694_s9, %s693_s27  ;;  %s844_s4 = scalar_lea.vmem %s529_s12, 384 }
  0x50   : > { %371 = vmatprep.subr.mxu0 %v342_v8  ;;  %662 = vmatpush3.msra.mxu1 %v343_v10  ;;  %v332_v22 = vld [vmem:[#allocation5 + $0xf0] sm:$0xff]  ;;  %v334_v23 = vld [vmem:[#allocation5 + $0x100] sm:$0xff]  ;;  %v329_v25 = vld [vmem:[#allocation5 + $0xd8] sm:$0xff]  ;;  %s637_s10 = sshll.u32 %s524_s26, 7  ;;  %p845_p1 = scmp.ne.s32.totalorder %s529_s12, %s844_s4 }
  0x51   : > { %372 = vmatpush1.msra.mxu0 %v341_v9  ;;  %663 = vmatprep.subr.mxu1 %v950_v4  ;;  %v330_v24 = vld [vmem:[#allocation5 + $0xe0] sm:$0xff]  ;;  %v331_v26 = vld [vmem:[#allocation5 + $0xe8] sm:$0xff]  ;;  %v328_v29 = vld [vmem:[#allocation5 + $0xd0] sm:$0xff]  ;;  %s952_s28 = smov [#allocation7]  }
  0x52   : > { %373 = vmatprep.subr.mxu0 %v339_v11  ;;  %664 = vmatpush3.msra.mxu1 %v340_v13  ;;  %v327_v27 = vld [vmem:[#allocation5 + $0xc8] sm:$0xff]  ;;  %v326_v28 = vld [vmem:[#allocation5 + $0xc0] sm:$0xff]  ;;  %v324_v30 = vld [vmem:[#allocation5 + $0xb0] sm:$0xff]  ;;  %s1232_s6 = smov %s1231_s18  ;;  %s526_s8 = scalar_lea.hbm %s1231_s18, %s637_s10 }
  0x53   : > { %374 = vmatpush1.msra.mxu0 %v338_v12  ;;  %665 = vmatprep.subr.mxu1 %v950_v4  ;;  %v323_v31 = vld [vmem:[#allocation5 + $0xa8] sm:$0xff]  ;;  %v325_v32 = vld [vmem:[#allocation5 + $0xb8] sm:$0xff]  ;;  %v320_v34 = vld [vmem:[#allocation5 + $0x90] sm:$0xff]  ;;  %p846_p8 = pnand %p845_p1, %p1071_p11  ;;  %s848_s30 = sshll.u32 %s952_s28, 4  ;;  %s849_s30 = int_to_ptr.vmem [resolvable:$false] %s848_s30 }
  0x54   : > { %431 = vmatprep.mubr.f32.mxu0 %v950_v4  ;;  %375 = vmatprep.subr.mxu0 %v336_v18  ;;  %v321_v33 = vld [vmem:[#allocation5 + $0x98] sm:$0xff]  ;;  %v322_v35 = vld [vmem:[#allocation5 + $0xa0] sm:$0xff]  ;;  %v319_v38 = vld [vmem:[#allocation5 + $0x88] sm:$0xff]  ;;  %s850_s7 = scalar_lea.vmem %s849_s30, 768  ;;  %p851_p2 = scmp.lt.s32.totalorder %s529_s12, %s849_s30 }
  0x55   : > { %376 = vmatpush1.msra.mxu0 %v335_v19  ;;  %666 = vmatpush3.msra.mxu1 %v337_v20  ;;  %v318_v36 = vld [vmem:[#allocation5 + $0x80] sm:$0xff]  ;;  %v317_v37 = vld [vmem:[#allocation5 + $0x78] sm:$0xff]  ;;  %v315_v39 = vld [vmem:[#allocation5 + $0x68] sm:$0xff]  ;;  %p847_p12 = pneg %p846_p8  ;;  %p852_p0 = scmp.lt.s32.totalorder %s850_s7, %s844_s4 }
  0x56   : > { %377 = vmatprep.subr.mxu0 %v333_v21  ;;  %667 = vmatprep.subr.mxu1 %v950_v4  ;;  %v314_v40 = vld [vmem:[#allocation5 + $0x60] sm:$0xff]  ;;  %v316_v41 = vld [vmem:[#allocation5 + $0x70] sm:$0xff]  ;;  %v311_v43 = vld [vmem:[#allocation5 + $0x48] sm:$0xff] }
  0x57   : > { %378 = vmatpush1.msra.mxu0 %v332_v22  ;;  %668 = vmatpush3.msra.mxu1 %v334_v23  ;;  %v312_v42 = vld [vmem:[#allocation5 + $0x50] sm:$0xff]  ;;  %v313_v44 = vld [vmem:[#allocation5 + $0x58] sm:$0xff]  ;;  %v310_v47 = vld [vmem:[#allocation5 + $0x40] sm:$0xff]  ;;  %p853_p3 = por %p852_p0, %p851_p2 }
  0x58   : > { %379 = vmatprep.subr.mxu0 %v330_v24  ;;  %669 = vmatprep.subr.mxu1 %v950_v4  ;;  %v309_v45 = vld [vmem:[#allocation5 + $0x38] sm:$0xff]  ;;  %v308_v46 = vld [vmem:[#allocation5 + $0x30] sm:$0xff]  ;;  %v306_v48 = vld [vmem:[#allocation5 + $0x20] sm:$0xff] }
  0x59   : > { %380 = vmatpush1.msra.mxu0 %v329_v25  ;;  %670 = vmatpush3.msra.mxu1 %v331_v26  ;;  %v305_v49 = vld [vmem:[#allocation5 + $0x18] sm:$0xff]  ;;  %v307_v50 = vld [vmem:[#allocation5 + $0x28] sm:$0xff]  ;;  %v302_v52 = vld [vmem:[#allocation5] sm:$0xff]  ;;  %p854_p5 = pnand %p853_p3, %p847_p12 }
  0x5a   : > { %381 = vmatprep.subr.mxu0 %v327_v27  ;;  %671 = vmatprep.subr.mxu1 %v950_v4  ;;  %v303_v51 = vld [vmem:[#allocation5 + $0x8] sm:$0xff]  ;;  %v304_v53 = vld [vmem:[#allocation5 + $0x10] sm:$0xff] }
  0x5b   : > { %382 = vmatpush1.msra.mxu0 %v326_v28  ;;  %672 = vmatpush3.msra.mxu1 %v328_v29  ;;  %v635_v58 = vld [vmem:[%s1200_s1] ss:$0 sm:$0xff] }
  0x5c   : > { %383 = vmatprep.subr.mxu0 %v324_v30  ;;  %673 = vmatprep.subr.mxu1 %v950_v4  ;;  %v636_v60 = vld [vmem:[%s1201_s2] ss:$0 sm:$0xff] }
  0x5d   : > { %384 = vmatpush1.msra.mxu0 %v323_v31  ;;  %674 = vmatpush3.msra.mxu1 %v325_v32  ;;  %v350_v3 = vld [vmem:[%s1229_s14] sm:$0x7] }
  0x5e   : > { %385 = vmatprep.subr.mxu0 %v321_v33  ;;  %675 = vmatprep.subr.mxu1 %v950_v4 }
  0x5f   : > { %386 = vmatpush1.msra.mxu0 %v320_v34  ;;  %676 = vmatpush3.msra.mxu1 %v322_v35 }
  0x60   : > { %387 = vmatprep.subr.mxu0 %v318_v36  ;;  %677 = vmatprep.subr.mxu1 %v950_v4 }
  0x61   : > { %388 = vmatpush1.msra.mxu0 %v317_v37  ;;  %678 = vmatpush3.msra.mxu1 %v319_v38 }
  0x62   : > { %389 = vmatprep.subr.mxu0 %v315_v39  ;;  %679 = vmatprep.subr.mxu1 %v950_v4 }
  0x63   : > { %390 = vmatpush1.msra.mxu0 %v314_v40  ;;  %680 = vmatpush3.msra.mxu1 %v316_v41 }
  0x64   : > { %391 = vmatprep.subr.mxu0 %v312_v42  ;;  %681 = vmatprep.subr.mxu1 %v950_v4 }
  0x65   : > { %392 = vmatpush1.msra.mxu0 %v311_v43  ;;  %682 = vmatpush3.msra.mxu1 %v313_v44 }
  0x66   : > { %393 = vmatprep.subr.mxu0 %v309_v45  ;;  %683 = vmatprep.subr.mxu1 %v950_v4 }
  0x67   : > { %394 = vmatpush1.msra.mxu0 %v308_v46  ;;  %684 = vmatpush3.msra.mxu1 %v310_v47 }
  0x68   : > { %395 = vmatprep.subr.mxu0 %v306_v48  ;;  %685 = vmatprep.subr.mxu1 %v950_v4 }
  0x69   : > { %396 = vmatpush1.msra.mxu0 %v305_v49  ;;  %686 = vmatpush3.msra.mxu1 %v307_v50 }
  0x6a   : > { %397 = vmatprep.subr.mxu0 %v303_v51  ;;  %687 = vmatprep.subr.mxu1 %v950_v4 }
  0x6b   : > { %398 = vmatpush1.msra.mxu0 %v302_v52  ;;  %688 = vmatpush3.msra.mxu1 %v304_v53 }
  0x6c   : > { %689 = vmatprep.mubr.msk.f32.mxu1 %vm951_vm0, %v950_v4 }
  0xd4   : > { %v277_v14 = vpop.xlane.xlu0 %276 }
  0xd5   : > { %v279_v15 = vmul.f32 0.0078125, %v277_v14 }
  0xd7   : > { %v1126_v16 = vsub.f32 %v273_v0, %v279_v15  ;;  %v353_v0 = vshrl.u32 %v352_v63, 7 }
  0xd9   : > { %v281_v17 = vmul.f32 %v1126_v16, %v1126_v16  ;;  %v354_v1 = vsub.s32 0, %v353_v0  ;;  %v362_v2 = vsub.s32 2, %v353_v0  ;;  %v358_v4 = vsub.s32 1, %v353_v0 }
  0xdb   : > { %282 = vadd.xlane.f32.xlu0 %v281_v17  ;;  %v355_v5 = vrot.slane %v350_v3, %v354_v1  ;;  %v363_v6 = vrot.slane %v350_v3, %v362_v2  ;;  %v359_v7 = vrot.slane %v350_v3, %v358_v4 }
 0x164   : > { %v283_v54 = vpop.xlane.xlu0 %282 }
 0x165   : > { %v284_v55 = vmul.f32 0.0078125, %v283_v54 }
 0x167   : > { %v285_v56 = vadd.f32 1e-05, %v284_v55 }
 0x169   : > { %788 = vrsqrt.f32 %v285_v56 }
 0x176   : > { %v789_v57 = vpop.eup %788 }
 0x177   : > { %v287_v59 = vmul.f32 %v789_v57, %v1126_v16 }
 0x179   : > { %v294_v61 = vmul.f32 %v635_v58, %v287_v59 }
 0x17b   : > { %v301_v62 = vadd.f32 %v636_v60, %v294_v61 }
 0x17d   : > { %432 = vmatmul.mubr.f32.vlgmr.msra.gmra.mxu0 %v301_v62  ;;  %690 = vmatmul.mubr.f32.vlgmr.msra.gmra.mxu1 %v301_v62 }
 0x23d   : > { %v433_v8 = vpop.f32.mrf.mxu0  ;;  %v504_v9 = vpop.f32.mrf.mxu1 }
 0x23e   : > { %v434_v10 = vadd.f32 %v433_v8, %v355_v5  ;;  %v505_v11 = vadd.f32 %v504_v9, %v363_v6 }
 0x23f   : > { %v435_v12 = vpop.f32.mrf.mxu0  ;;  %v691_v13 = vpop.f32.mrf.mxu1 }
 0x240   : > { %508 = vst [vmem:[%s272_s11] sm:$0xff] %v434_v10  ;;  %510 = vst [vmem:[%s272_s11 + $0x10] sm:$0xff] %v505_v11  ;;  %v436_v14 = vadd.f32 %v435_v12, %v359_v7 }
 0x242   : > { %509 = vst [vmem:[%s272_s11 + $0x8] sm:$0xff] %v436_v14 }
 0x243   : > { %857 = shalt.err (!%p854_p5)
}
 0x244   : > { %s858_s27 = scalar_lea.hbm %s526_s8, 384  ;;  %s862_s13 = scalar_lea.hbm %s1232_s6, 3072 }
 0x245   : > { %p859_p4 = scmp.ne.s32.totalorder %s526_s8, %s858_s27  ;;  %p863_p9 = scmp.lt.s32.totalorder %s526_s8, %s1232_s6 }
 0x246   : > { %p864_p13 = scmp.lt.s32.totalorder %s862_s13, %s858_s27 }
 0x247   : > { %p860_p6 = pnand %p859_p4, %p1071_p11 }
 0x248   : > { %p865_p10 = por %p864_p13, %p863_p9 }
 0x249   : > { %p861_p7 = pneg %p860_p6 }
 0x24b   : > { %p866_p1 = pnand %p865_p10, %p861_p7 }
 0x24d   : > { %869 = shalt.err (!%p866_p1)
}
 0x24e   : > { %701 = dma.vmem_to_hbm [thread:$0]  (%p1071_p11), %s529_s12, 384, %s526_s8, %s512_s3  }
 0x24f PF: > { %s1233_s26 = sld [smem:[#allocation11_spill]]  ;;  %p718_p8 = scmp.ge.s32.totalorder %s944_s25, 2 }
 0x250   : > { %s1234_s10 = sld [smem:[#allocation12_spill]] }
 0x255   : > { %s540_s11 = sand.u32 1, %s1233_s26  }
 0x256   : > { %p1235_p12 = scmp.ne.s32.totalorder %s1234_s10, 0  ;;  %s541_s21 = scalar_lea.sflag [#allocation4], %s540_s11 }
 0x258   : > { %p712_p2 = pnand %p718_p8, %p1235_p12 }
 0x25a   : > { %p713_p0 = pneg %p712_p2 }
 0x25c   : > { %911 = dma.done.wait (%p713_p0), %s541_s21, 384  }
 0x25d   : > { %913 = vsyncadd (%p713_p0), %s541_s21, 4294966912  ;;  %s22_s25 = sadd.s32 1, %s944_s25   ;;  %s1236_s17 = sld [smem:[#allocation13_spill]] }
 0x25e   : > { %p19_p3 = scmp.ge.s32.totalorder %s22_s25, 10   ;;  %s1237_s18 = smov %s920_s19 }
 0x25f   : > { %s1238_s19 = smov %s924_s20  ;;  %s1239_s20 = smov %s1088_s15 }
 0x260   : > { %s1240_s21 = smov %s936_s23  ;;  %s1241_s22 = smov %s940_s24 }
 0x261   : > { %s1243_s24 = smov %s1249_s16  ;;  %21 = sbr.rel (!%p19_p3) target bundleno = 12 (0xc), region = 89 }
 0x263   : > { %s1242_s23 = smov %s1236_s17 }
 0x266   :  { %546 = vsyncpa [#allocation3], 1 }
 0x267   :  { %548 = vsyncpa [#allocation3 + $0x1], 1 }
 0x268   :  { %549 = vsyncpa [#allocation6], 1 }
 0x269   :  { %550 = vsyncpa [#allocation4], 1 }
 0x26a   :  { %552 = vsyncpa [#allocation4 + $0x1], 1 }

</bundles_post_ra>
